<compile_context>
chip_gen: v7x
topology: tpu7x:2x2x1
jax: 0.10.0
libtpu: 0.0.40
codegen_flags: <defaults>
</compile_context>

<pallas_src>
import functools

import jax
import jax.numpy as jnp
from jax.experimental import pallas as pl
from jax.experimental.pallas import tpu as pltpu


def _choose_conv_tile(l_conv_eff, c_in, itemsize):
    """Even conv-tile length along the 128-lane axis, VMEM-budget aware."""
    if l_conv_eff <= 1024:
        return max(l_conv_eff, 2)            # single tile: block == full array dims
    budget = 2 << 20                         # ~2 MiB for the (C_in, TL_in) input block
    tl = (budget // max(c_in * itemsize, 1)) // 256 * 256
    return int(min(1024, max(256, tl)))      # multiple of 256 -> lane-dense pooled stores


def _vmem_limit_bytes(c_in, c_out, k, tl_conv, tl_in, tl_pool, itemsize):
    """Scoped-VMEM budget from the actual block sizes (+ headroom), clamped."""
    x_blk = c_in * tl_in * itemsize
    w_blk = k * c_out * c_in * itemsize
    p_blk = tl_conv * tl_pool * 4
    o_blk = c_out * tl_pool * 4
    acc = c_out * tl_conv * 4
    est = 2 * (x_blk + w_blk + c_out * 4 + p_blk + o_blk) + 3 * acc + 2 * x_blk
    return int(min(max(est + (16 << 20), 32 << 20), 64 << 20))


def _make_kernel(K, TL_conv):
    def kernel(x_ref, w_ref, b_ref, p_ref, o_ref):
        # x_ref: (1, 1, C_in, TL_conv + K - 1)  overlapping input window (length on lanes)
        # w_ref: (K, C_out, C_in)               per-tap weights (constant index_map)
        # b_ref: (C_out, 1)                     bias
        # p_ref: (TL_conv, TL_pool)             constant 0/0.5 avg-pool selection matrix
        # o_ref: (1, C_out, TL_pool)            pooled output tile
        x = x_ref[0, 0]                                             # (C_in, TL_in)
        acc = jnp.dot(w_ref[0], x[:, 0:TL_conv],
                      preferred_element_type=jnp.float32)           # (C_out, TL_conv) f32
        for k in range(1, K):                                       # K is small: static unroll
            acc = acc + jnp.dot(w_ref[k], x[:, k:k + TL_conv],
                                preferred_element_type=jnp.float32)
        acc = jnp.maximum(acc + b_ref[...], 0.0)                    # bias + ReLU (f32, VPU)
        # AvgPool1d(kernel=2, stride=2) as one MXU matmul (MXU has huge slack here).
        o_ref[0] = jnp.dot(acc, p_ref[...],
                           preferred_element_type=jnp.float32).astype(o_ref.dtype)
    return kernel


def feature_extractor_block(x_ncl, weight_oik, bias_o, *, kernel_size, stride=1,
                            matmul_dtype=None):
    """Pallas equivalent of FeatureExtractorBlock.forward.

    x_ncl:      (B, C_in, L)        float32 (PyTorch NCL layout)
    weight_oik: (C_out, C_in, K)    float32 (PyTorch Conv1d weight layout)
    bias_o:     (C_out,)            float32
    returns:    (B, C_out, L_pool)  same layout as PyTorch
    matmul_dtype: set to jnp.bfloat16 on v6e/v7x for native-MXU operands
                  (f32 accumulation is kept); default None == f32 numerics.
    """
    assert stride == 1, "only stride=1 (module default) is implemented"
    B, C_in, L = x_ncl.shape
    C_out, C_in_w, K = weight_oik.shape
    assert C_in_w == C_in and K == kernel_size

    pad = K // 2
    L_conv = L + 2 * pad - K + 1
    L_pool = L_conv // 2
    assert L_pool >= 1, "input too short for AvgPool1d(2, 2)"
    L_conv_eff = 2 * L_pool                       # conv columns that survive the pool

    op_dtype = jnp.dtype(matmul_dtype) if matmul_dtype is not None else jnp.dtype(x_ncl.dtype)
    TL_conv = _choose_conv_tile(L_conv_eff, C_in, op_dtype.itemsize)
    TL_pool = TL_conv // 2
    nt = pl.cdiv(L_conv_eff, TL_conv)
    TL_in = TL_conv + K - 1

    # Overlapping per-tile windows with the "same" zero padding folded into one
    # clamped-gather + mask pass (no jnp.pad round trip, no separate halo array,
    # no in-kernel stitching).
    col = (jnp.arange(nt, dtype=jnp.int32)[:, None] * TL_conv
           + jnp.arange(TL_in, dtype=jnp.int32)[None, :] - pad)      # original coords
    valid = (col >= 0) & (col < L)
    col_c = jnp.clip(col, 0, L - 1)
    x_g = jnp.take(x_ncl, col_c, axis=2)                             # (B, C_in, nt, TL_in)
    x_g = jnp.where(valid[None, None], x_g, 0).astype(x_ncl.dtype)
    x_tiles = jnp.transpose(x_g, (0, 2, 1, 3))                       # (B, nt, C_in, TL_in)

    # Weights as (K, C_out, C_in), bias as (C_out, 1). Pre-cast ONCE in the wrapper
    # (no per-step casts / extra VMEM copies in the kernel).
    w3 = jnp.transpose(weight_oik, (2, 0, 1))
    if matmul_dtype is not None:
        w3 = w3.astype(matmul_dtype)
        x_tiles = x_tiles.astype(matmul_dtype)
    b2 = bias_o.reshape(C_out, 1).astype(jnp.float32)

    # Constant pool-selection matrix: pooled[:, j] = 0.5*(acc[:, 2j] + acc[:, 2j+1]).
    pmat = jnp.where(jnp.arange(TL_conv)[:, None] // 2 == jnp.arange(TL_pool)[None, :],
                     0.5, 0.0).astype(jnp.float32)

    kernel = _make_kernel(K, TL_conv)
    out = pl.pallas_call(
        kernel,
        out_shape=jax.ShapeDtypeStruct((B, C_out, nt * TL_pool), x_ncl.dtype),
        grid=(B, nt),
        in_specs=[
            pl.BlockSpec((1, 1, C_in, TL_in), lambda b, t: (b, t, 0, 0)),
            pl.BlockSpec((K, C_out, C_in), lambda b, t: (0, 0, 0)),
            pl.BlockSpec((C_out, 1), lambda b, t: (0, 0)),
            pl.BlockSpec((TL_conv, TL_pool), lambda b, t: (0, 0)),
        ],
        out_specs=pl.BlockSpec((1, C_out, TL_pool), lambda b, t: (b, 0, t)),
        compiler_params=pltpu.CompilerParams(
            dimension_semantics=("parallel", "parallel"),
            vmem_limit_bytes=_vmem_limit_bytes(C_in, C_out, K, TL_conv, TL_in,
                                               TL_pool, op_dtype.itemsize)),
    )(x_tiles, w3, b2, pmat)

    return out[:, :, :L_pool]


def _reference(x_ncl, weight_oik, bias_o, kernel_size, stride=1):
    """Plain-JAX reference (same math, no Pallas) for a correctness check."""
    pad = kernel_size // 2
    B, C_in, L = x_ncl.shape
    K = kernel_size
    L_conv = (L + 2 * pad - K) // stride + 1
    xp = jnp.pad(x_ncl, ((0, 0), (0, 0), (pad, pad)))
    acc = jnp.zeros((B, weight_oik.shape[0], L_conv), jnp.float32)
    for k in range(K):
        acc = acc + jnp.einsum("oi,bil->bol", weight_oik[:, :, k],
                               xp[:, :, k:k + L_conv])
    acc = jnp.maximum(acc + bias_o[None, :, None], 0.0)
    Lp = L_conv // 2
    return 0.5 * (acc[:, :, 0:2 * Lp:2] + acc[:, :, 1:2 * Lp:2])


if __name__ == "__main__":
    key = jax.random.PRNGKey(0)

    def _init(k, c_in, c_out, ks):
        kw, kb = jax.random.split(k)
        bound = 1.0 / ((c_in * ks) ** 0.5)
        w = jax.random.uniform(kw, (c_out, c_in, ks), jnp.float32, -bound, bound)
        b = jax.random.uniform(kb, (c_out,), jnp.float32, -bound, bound)
        return w, b

    # --- Test 1: small shapes (single length tile), matches the module demo.
    B, C_in, C_out, L, K = 2, 4, 8, 16, 3
    k1, k2, key = jax.random.split(key, 3)
    x = jax.random.normal(k1, (B, C_in, L), jnp.float32)
    w, b = _init(k2, C_in, C_out, K)
    fn = jax.jit(functools.partial(feature_extractor_block, kernel_size=K))
    out = fn(x, w, b)
    jax.block_until_ready(out)
    ref = _reference(x, w, b, K)
    assert out.shape == (B, C_out, L // 2), out.shape
    assert jnp.allclose(out, ref, atol=1e-4, rtol=1e-4), "mismatch (small case)"

    # --- Test 2: longer sequence exercising the L-tiled grid + overlapping windows.
    B2, C_in2, C_out2, L2, K2 = 2, 4, 8, 1280, 5
    k3, k4, key = jax.random.split(key, 3)
    x2 = jax.random.normal(k3, (B2, C_in2, L2), jnp.float32)
    wB, bB = _init(k4, C_in2, C_out2, K2)
    fn2 = jax.jit(functools.partial(feature_extractor_block, kernel_size=K2))
    out2 = fn2(x2, wB, bB)
    jax.block_until_ready(out2)
    ref2 = _reference(x2, wB, bB, K2)
    assert out2.shape == (B2, C_out2, L2 // 2), out2.shape
    assert jnp.allclose(out2, ref2, atol=1e-4, rtol=1e-4), "mismatch (tiled case)"

    print("KERNEL_OK")
</pallas_src>

<mosaic_0001>
module attributes {stable_mosaic.version = 11 : i64} {
  func.func @kernel(%arg0: i32, %arg1: i32, %arg2: memref<1x1x4x18xf32, #tpu.memory_space<vmem>>, %arg3: memref<3x8x4xf32, #tpu.memory_space<vmem>>, %arg4: memref<8x1xf32, #tpu.memory_space<vmem>>, %arg5: memref<16x8xf32, #tpu.memory_space<vmem>>, %arg6: memref<1x8x8xf32, #tpu.memory_space<vmem>>) attributes {dimension_semantics = [#tpu.dimension_semantics<parallel>, #tpu.dimension_semantics<parallel>], iteration_bounds = array<i64: 2, 1>, scalar_prefetch = 0 : i64, scratch_operands = 0 : i64, tpu.core_type = #tpu.core_type<tc>, window_params = [{transform_indices = @transform_0, window_bounds = array<i64: 1, 1, 4, 18>}, {pipeline_mode = #tpu.pipeline_mode<synchronous>, transform_indices = @transform_1, window_bounds = array<i64: 3, 8, 4>}, {pipeline_mode = #tpu.pipeline_mode<synchronous>, transform_indices = @transform_2, window_bounds = array<i64: 8, 1>}, {pipeline_mode = #tpu.pipeline_mode<synchronous>, transform_indices = @transform_3, window_bounds = array<i64: 16, 8>}, {transform_indices = @transform_4, window_bounds = array<i64: 1, 8, 8>}]} {
    %c0 = arith.constant 0 : index
    %c0_0 = arith.constant 0 : index
    %c0_1 = arith.constant 0 : index
    %c0_2 = arith.constant 0 : index
    %0 = vector.load %arg2[%c0, %c0_0, %c0_1, %c0_2] : memref<1x1x4x18xf32, #tpu.memory_space<vmem>>, vector<1x1x4x18xf32>
    %1 = vector.shape_cast %0 : vector<1x1x4x18xf32> to vector<4x18xf32>
    %c0_3 = arith.constant 0 : index
    %c0_4 = arith.constant 0 : index
    %c0_5 = arith.constant 0 : index
    %2 = vector.load %arg3[%c0_3, %c0_4, %c0_5] : memref<3x8x4xf32, #tpu.memory_space<vmem>>, vector<1x8x4xf32>
    %3 = vector.shape_cast %2 : vector<1x8x4xf32> to vector<8x4xf32>
    %4 = vector.extract_strided_slice %1 {offsets = [0, 0], sizes = [4, 16], strides = [1, 1]} : vector<4x18xf32> to vector<4x16xf32>
    %cst = arith.constant dense<0.000000e+00> : vector<8x16xf32>
    %5 = tpu.matmul %3, %4, %cst {dimension_numbers = #tpu.dot_dimension_numbers<[1], [0], [0], [1], [0, 0, 1, 1], [], []>} : vector<8x4xf32>, vector<4x16xf32>, vector<8x16xf32> -> vector<8x16xf32>
    %c1 = arith.constant 1 : index
    %c0_6 = arith.constant 0 : index
    %c0_7 = arith.constant 0 : index
    %6 = vector.load %arg3[%c1, %c0_6, %c0_7] : memref<3x8x4xf32, #tpu.memory_space<vmem>>, vector<1x8x4xf32>
    %7 = vector.shape_cast %6 : vector<1x8x4xf32> to vector<8x4xf32>
    %8 = vector.extract_strided_slice %1 {offsets = [0, 1], sizes = [4, 16], strides = [1, 1]} : vector<4x18xf32> to vector<4x16xf32>
    %cst_8 = arith.constant dense<0.000000e+00> : vector<8x16xf32>
    %9 = tpu.matmul %7, %8, %cst_8 {dimension_numbers = #tpu.dot_dimension_numbers<[1], [0], [0], [1], [0, 0, 1, 1], [], []>} : vector<8x4xf32>, vector<4x16xf32>, vector<8x16xf32> -> vector<8x16xf32>
    %10 = arith.addf %5, %9 : vector<8x16xf32>
    %c2 = arith.constant 2 : index
    %c0_9 = arith.constant 0 : index
    %c0_10 = arith.constant 0 : index
    %11 = vector.load %arg3[%c2, %c0_9, %c0_10] : memref<3x8x4xf32, #tpu.memory_space<vmem>>, vector<1x8x4xf32>
    %12 = vector.shape_cast %11 : vector<1x8x4xf32> to vector<8x4xf32>
    %13 = vector.extract_strided_slice %1 {offsets = [0, 2], sizes = [4, 16], strides = [1, 1]} : vector<4x18xf32> to vector<4x16xf32>
    %cst_11 = arith.constant dense<0.000000e+00> : vector<8x16xf32>
    %14 = tpu.matmul %12, %13, %cst_11 {dimension_numbers = #tpu.dot_dimension_numbers<[1], [0], [0], [1], [0, 0, 1, 1], [], []>} : vector<8x4xf32>, vector<4x16xf32>, vector<8x16xf32> -> vector<8x16xf32>
    %15 = arith.addf %10, %14 : vector<8x16xf32>
    %c0_12 = arith.constant 0 : index
    %c0_13 = arith.constant 0 : index
    %16 = vector.load %arg4[%c0_12, %c0_13] : memref<8x1xf32, #tpu.memory_space<vmem>>, vector<8x1xf32>
    %17 = vector.broadcast %16 : vector<8x1xf32> to vector<8x16xf32>
    %18 = arith.addf %15, %17 : vector<8x16xf32>
    %cst_14 = arith.constant 0.000000e+00 : f32
    %19 = vector.broadcast %cst_14 : f32 to vector<8x16xf32>
    %20 = arith.maximumf %18, %19 : vector<8x16xf32>
    %c0_15 = arith.constant 0 : index
    %c0_16 = arith.constant 0 : index
    %21 = vector.load %arg5[%c0_15, %c0_16] : memref<16x8xf32, #tpu.memory_space<vmem>>, vector<16x8xf32>
    %cst_17 = arith.constant dense<0.000000e+00> : vector<8x8xf32>
    %22 = tpu.matmul %20, %21, %cst_17 {dimension_numbers = #tpu.dot_dimension_numbers<[1], [0], [0], [1], [0, 0, 1, 1], [], []>} : vector<8x16xf32>, vector<16x8xf32>, vector<8x8xf32> -> vector<8x8xf32>
    %c0_18 = arith.constant 0 : index
    %c0_19 = arith.constant 0 : index
    %c0_20 = arith.constant 0 : index
    %23 = vector.load %arg6[%c0_18, %c0_19, %c0_20] : memref<1x8x8xf32, #tpu.memory_space<vmem>>, vector<1x8x8xf32>
    %24 = vector.shape_cast %23 : vector<1x8x8xf32> to vector<8x8xf32>
    %25 = vector.shape_cast %22 : vector<8x8xf32> to vector<1x8x8xf32>
    tpu.vector_store %arg6[%c0_18, %c0_19, %c0_20], %25 {strides = array<i32>} : memref<1x8x8xf32, #tpu.memory_space<vmem>>, vector<1x8x8xf32>,
    return
  }
  func.func @transform_0(%arg0: i32, %arg1: i32) -> (i32, i32, i32, i32) {
    %c0_i32 = arith.constant 0 : i32
    %c0_i32_0 = arith.constant 0 : i32
    %c0_i32_1 = arith.constant 0 : i32
    return %arg0, %arg1, %c0_i32, %c0_i32_0 : i32, i32, i32, i32
  }
  func.func @transform_1(%arg0: i32, %arg1: i32) -> (i32, i32, i32) {
    %c0_i32 = arith.constant 0 : i32
    %c0_i32_0 = arith.constant 0 : i32
    %c0_i32_1 = arith.constant 0 : i32
    %c0_i32_2 = arith.constant 0 : i32
    return %c0_i32, %c0_i32_0, %c0_i32_1 : i32, i32, i32
  }
  func.func @transform_2(%arg0: i32, %arg1: i32) -> (i32, i32) {
    %c0_i32 = arith.constant 0 : i32
    %c0_i32_0 = arith.constant 0 : i32
    %c0_i32_1 = arith.constant 0 : i32
    return %c0_i32, %c0_i32_0 : i32, i32
  }
  func.func @transform_3(%arg0: i32, %arg1: i32) -> (i32, i32) {
    %c0_i32 = arith.constant 0 : i32
    %c0_i32_0 = arith.constant 0 : i32
    %c0_i32_1 = arith.constant 0 : i32
    return %c0_i32, %c0_i32_0 : i32, i32
  }
  func.func @transform_4(%arg0: i32, %arg1: i32) -> (i32, i32, i32) {
    %c0_i32 = arith.constant 0 : i32
    %c0_i32_0 = arith.constant 0 : i32
    return %arg0, %c0_i32, %arg1 : i32, i32, i32
  }
}

</mosaic_0001>

<bundles_post_ra>
// kernel: feature_extractor_block.1
= control target key start
LH: loop header
LB: loop body
LE: loop exit
PB: predicated region body
PF: predicated region fallthrough
CT: control target
= control target key end

     0   :  { %9 = vsyncpa [#allocation3], 0  ;;  %s998_s0 = inlined_call_operand.vmem [shape: f32[2,1,4,18], index: 0, kind: input, shape index: {}]   ;;  %s999_s1 = inlined_call_operand.vmem [shape: f32[3,8,4], index: 1, kind: input, shape index: {}]   ;;  %s1000_s2 = inlined_call_operand.vmem [shape: f32[8,1], index: 2, kind: input, shape index: {}]   ;;  %s1001_s3 = inlined_call_operand.vmem [shape: f32[16,8], index: 3, kind: input, shape index: {}]   ;;  %s1002_s4 = inlined_call_operand.hbm [shape: f32[2,8,8], index: 4, kind: output, shape index: {}]  }
   0x1   :  { %11 = vsyncpa [#allocation3 + $0x1], 0  ;;  %s858_s15 = smov 0   ;;  %s860_s16 = smov 0  }
   0x2   :  { %s862_s17 = smov 0   ;;  %s864_s18 = smov 0  }
   0x3   :  { %s866_s19 = smov 0   ;;  %s868_s20 = smov 0  }
   0x4 LB: > { %s629_s21 = sadd.s32 4294967295, %s824_s20   ;;  %s630_s22 = sadd.s32 4294967294, %s824_s20   ;;  %s824_s20 = sphi %s868_s20, %s17_s20   ;;  %s820_s19 = sphi %s866_s19, %s1009_s19   ;;  %s816_s18 = sphi %s864_s18, %s1008_s18   ;;  %s812_s17 = sphi %s862_s17, %s1007_s17   ;;  %s808_s16 = sphi %s860_s16, %s1006_s16   ;;  %s804_s15 = sphi %s858_s15, %s1005_s15  }
   0x5   : > { %s29_s23 = sadd.s32 1, %s820_s19  ;;  %s129_s24 = sadd.s32 1, %s812_s17 }
   0x6   : > { %p31_p0 = scmp.ge.s32.totalorder %s29_s23, 2  ;;  %p139_p1 = scmp.ne.s32.totalorder %s812_s17, %s808_s16 }
   0x7   : > { %p140_p2 = scmp.eq.s32.totalorder %s629_s21, 1  ;;  %p145_p3 = scmp.ne.s32.totalorder %s808_s16, %s804_s15 }
   0x8   : > { %s1011_s23 = smov (%p31_p0, %s29_s23), 0  ;;  %p146_p5 = scmp.eq.s32.totalorder %s630_s22, 1 }
   0x9   : > { %p898_p4 = por %p140_p2, %p139_p1  ;;  %s124_s26 = ssub.s32 %s820_s19, %s1011_s23 }
   0xa   : > { %p633_p6 = scmp.ge.s32.totalorder %s824_s20, 1  ;;  %p127_p7 = scmp.eq.s32.totalorder %s124_s26, 0 }
   0xb   : > { %p905_p8 = por %p146_p5, %p145_p3  ;;  %p183_p9 = scmp.lt.s32.totalorder %s824_s20, 3 }
   0xc   : > { %s911_s28 = scalar_select %p127_p7, %s812_s17, %s129_s24  }
   0xd   : > { %p184_p10 = pnand %p633_p6, %p183_p9 }
   0xe   : > { %p211_p11 = scmp.lt.s32.totalorder (!%p184_p10), %s816_s18, 1  ;;  %v826_v0 = vmov (!%p184_p10), 0.0   ;;  %vm827_vm0 = vmmov (!%p184_p10), 0   ;;  %v457_v1 = vld [vmem:[%s1000_s2] sm:$0xff] (!%p184_p10)  ;;  %v828_v2 = vmov (!%p184_p10), 0   ;;  %vm229_vm1 = vcmask (!%p184_p10), 1043456  }
   0xf   : > { %187 = sbr.rel (%p184_p10) target bundleno = 591 (0x24f), region = 36  ;;  %658 = vmatprep.subr.mxu0 (!%p184_p10), %v826_v0  ;;  %660 = vmatprep.mubr.msk.f32.mxu0 (!%p184_p10), %vm827_vm0, %v826_v0  ;;  %vm225_vm2 = vcmask (!%p184_p10), 31744   ;;  %v219_v3 = vld [vmem:[%s999_s1] sm:$0xff] (!%p184_p10)  ;;  %s829_s12 = smov (!%p184_p10), 127   ;;  %v636_v5 = vld [vmem:[%s999_s1 + $0x8] sm:$0xff] (!%p184_p10)  ;;  %v641_v7 = vld [vmem:[%s999_s1 + $0x10] sm:$0xff] (!%p184_p10) }
  0x10   : > { %663 = vmatprep.subr.mxu1 (!%p184_p10), %v826_v0  ;;  %665 = vmatprep.mubr.msk.f32.mxu1 (!%p184_p10), %vm827_vm0, %v826_v0  ;;  %s830_s13 = smov (!%p184_p10), 126   ;;  %v465_v9 = vld [vmem:[%s1001_s3] sm:$0xff] (!%p184_p10)  ;;  %v466_v10 = vld [vmem:[%s1001_s3 + $0x8] sm:$0xff] (!%p184_p10)  ;;  %v831_v12 = vmov (!%p184_p10), 0.0|0.0   ;;  %vm467_vm3 = vcmask (!%p184_p10), 130048   ;;  %s646_s8 = sshll.u32 (!%p184_p10), %s816_s18, 7 }
  0x11   : > { %744 = vset.pattern.permute.xlu1 (!%p184_p10), %v828_v2  ;;  %745 = vset.pattern.permute.xlu0 (!%p184_p10), %v828_v2  ;;  %v681_v11 = vpack.c.bf16 (!%p184_p10), %v466_v10, %v465_v9  ;;  %vm541_vm4 = vcmask (!%p184_p10), 64512  }
  0x12   : > { %460 = vperm.xlu1 (!%p184_p10), %744, %v457_v1  }
  0x16   : > { %s212_s5 = scalar_select %p211_p11, %s816_s18, 1 }
  0x17   : > { %s832_s18 = smov [#allocation2]  }
  0x18   : > { %s635_s6 = sshll.u32 %s212_s5, 2  ;;  %s750_s22 = sshll.u32 %s832_s18, 4  ;;  %s751_s22 = int_to_ptr.vmem [resolvable:$false] %s750_s22 }
  0x19   : > { %s217_s9 = scalar_lea.vmem %s998_s0, %s635_s6  ;;  %s208_s6 = sand.u32 1, %s808_s16  }
  0x1a   : > { %v218_v4 = vld [vmem:[%s217_s9] sm:$0xf]  ;;  %s634_s7 = sshll.u32 %s208_s6, 3  ;;  %s544_s14 = scalar_lea.sflag [#allocation3], %s208_s6 }
  0x1b   : > { %223 = vrot.lane.b32.xlu0 %v218_v4, %s829_s12  ;;  %664 = vmatpush3.msk.msra.mxu1 %vm229_vm1, %v218_v4  ;;  %s210_s9 = scalar_lea.vmem [#allocation2], %s634_s7  ;;  %s752_s24 = scalar_lea.vmem %s751_s22, 256 }
  0x1c   : > { %666 = vmatmul.mubr.msk.f32.vlgmr.msra.gmra.mrb[0].mxu1 %vm225_vm2, %v219_v3  ;;  %680 = vmatprep.subr.bf16.mxu1 %v831_v12  ;;  %s558_s10 = sshll.u32 %s210_s9, 4  ;;  %s953_s10 = int_to_ptr.vmem [resolvable:$true] %s558_s10 }
  0x1d   : > { %677 = vmatprep.mubr.msk.f32.mxu1 %vm827_vm0, %v826_v0  ;;  %682 = vmatpush3.bf16.msra.mxu1 %v681_v11  ;;  %s746_s21 = scalar_lea.vmem %s953_s10, 128  ;;  %p753_p1 = scmp.lt.s32.totalorder %s953_s10, %s751_s22 }
  0x1e   : > { %p747_p12 = scmp.ne.s32.totalorder %s953_s10, %s746_s21  ;;  %p754_p2 = scmp.lt.s32.totalorder %s752_s24, %s746_s21 }
  0x1f   : > { %379 = vrot.lane.b32.xlu0 %v218_v4, %s830_s13  ;;  %s951_s13 = scalar_lea.hbm %s1002_s4, %s646_s8 }
  0x20   : > { %p748_p13 = pnand %p747_p12, %p898_p4  ;;  %p755_p3 = por %p754_p2, %p753_p1 }
  0x22   : > { %p749_p0 = pneg %p748_p13 }
  0x24   : > { %p756_p5 = pnand %p755_p3, %p749_p0 }
  0x8d   : > { %v224_v6 = vpop.permute.xlu0 %223 }
  0x8e   : > { %659 = vmatpush3.msk.msra.mxu0 %vm229_vm1, %v224_v6 }
  0x8f   : > { %661 = vmatmul.mubr.msk.f32.vlgmr.msra.gmra.mrb[0].mxu0 %vm225_vm2, %v636_v5  ;;  %668 = vmatprep.subr.mxu0 %v826_v0 }
  0x90   : > { %670 = vmatprep.mubr.msk.f32.mxu0 %vm827_vm0, %v826_v0 }
  0x91   : > { %v380_v8 = vpop.permute.xlu0 %379  ;;  %v461_v19 = vpop.permute.xlu1 %460 }
  0x92   : > { %669 = vmatpush3.msk.msra.mxu0 %vm229_vm1, %v380_v8 }
  0x93   : > { %671 = vmatmul.mubr.msk.f32.vlgmr.msra.gmra.mrb[2].mxu0 %vm225_vm2, %v641_v7 }
  0xef   : > { %v373_v13 = vpop.f32.mrb[0].mxu1 }
  0xf0   : > { %v667_v14 = vpop.f32.mrb[1].mxu1 }
 0x162   : > { %v298_v15 = vpop.f32.mrb[0].mxu0 }
 0x163   : > { %v374_v16 = vadd.f32 %v373_v13, %v298_v15  ;;  %v662_v17 = vpop.f32.mrb[1].mxu0 }
 0x166   : > { %v452_v18 = vpop.f32.mrb[2].mxu0 }
 0x167   : > { %v456_v20 = vadd.f32 %v452_v18, %v374_v16  ;;  %v672_v21 = vpop.f32.mrb[3].mxu0 }
 0x169   : > { %v463_v22 = vadd.f32 %v461_v19, %v456_v20 }
 0x16b   : > { %v464_v23 = vmax.f32 %v463_v22, 0.0 }
 0x16d   : > { %678 = vmatmul.mubr.msk.f32.vlgmr.msra.gmra.mrb[2].mxu1 %vm467_vm3, %v464_v23 }
 0x240   : > { %v537_v24 = vpop.f32.mrb[2].mxu1 }
 0x241   : > { %542 = vst.msk [vmem:[%s210_s9] sm:$0xff] %vm541_vm4, %v537_v24  ;;  %v679_v25 = vpop.f32.mrb[3].mxu1 }
 0x242   : > { %759 = shalt.err (!%p756_p5)
}
 0x243   : > { %s760_s26 = scalar_lea.hbm %s951_s13, 128  ;;  %s764_s5 = scalar_lea.hbm %s1002_s4, 256 }
 0x244   : > { %p761_p6 = scmp.ne.s32.totalorder %s951_s13, %s760_s26  ;;  %p765_p10 = scmp.lt.u32.totalorder %s951_s13, %s1002_s4 }
 0x245   : > { %p766_p11 = scmp.lt.u32.totalorder %s764_s5, %s760_s26  ;;  %p768_p13 = scmp.lt.u32.totalorder %s760_s26, %s951_s13 }
 0x246   : > { %p762_p7 = pnand %p761_p6, %p898_p4 }
 0x247   : > { %p767_p12 = por %p766_p11, %p765_p10 }
 0x248   : > { %p763_p9 = pneg %p762_p7 }
 0x249   : > { %p769_p0 = por %p768_p13, %p767_p12 }
 0x24b   : > { %p770_p1 = pnand %p769_p0, %p763_p9 }
 0x24d   : > { %773 = shalt.err (!%p770_p1)
}
 0x24e   : > { %683 = dma.vmem_to_hbm [thread:$0]  (%p898_p4), %s953_s10, 128, %s951_s13, %s544_s14  }
 0x24f PF: > { %p689_p2 = scmp.ge.s32.totalorder %s824_s20, 2  ;;  %s570_s8 = sand.u32 1, %s804_s15  }
 0x250   : > { %s571_s9 = scalar_lea.sflag [#allocation3], %s570_s8 }
 0x251   : > { %p686_p3 = pnand %p689_p2, %p905_p8 }
 0x253   : > { %799 = dma.done.wait (!%p686_p3), %s571_s9, 128  }
 0x254   : > { %801 = vsyncadd (!%p686_p3), %s571_s9, 4294967168  ;;  %s17_s20 = sadd.s32 1, %s824_s20   ;;  %s1005_s15 = smov %s808_s16 }
 0x255   : > { %p14_p5 = scmp.ge.s32.totalorder %s17_s20, 4   ;;  %s1006_s16 = smov %s812_s17 }
 0x256   : > { %s1007_s17 = smov %s911_s28  ;;  %s1008_s18 = smov %s820_s19 }
 0x257   : > { %s1009_s19 = smov %s1011_s23  ;;  %16 = sbr.rel (!%p14_p5) target bundleno = 4 (0x4), region = 73 }
 0x25e   :  { %576 = vsyncpa [#allocation3], 1 }
 0x25f   :  { %578 = vsyncpa [#allocation3 + $0x1], 1 }

</bundles_post_ra>
